<compile_context>
chip_gen: v6e
topology: v6e:2x2x1
jax: 0.10.0
libtpu: 0.0.40
codegen_flags: <defaults>
</compile_context>

<pallas_src>
import math

import jax
import jax.numpy as jnp
import numpy as np
from jax import lax
from jax.experimental import pallas as pl
from jax.experimental.pallas import tpu as pltpu


# -----------------------------------------------------------------------------
# Hardware query (generation-aware VMEM / tile budgeting)
# -----------------------------------------------------------------------------
def _vmem_capacity_bytes(default=64 * 2**20):
    try:
        return int(pltpu.get_tpu_info().vmem_capacity_bytes)
    except Exception:
        return default  # conservative (v7x-sized) fallback


# -----------------------------------------------------------------------------
# Kernel 1: per-head linear projection   x(B,S,D) -> (B,H,S,d_k)
# -----------------------------------------------------------------------------
def _proj_kernel(x_ref, w_ref, b_ref, out_ref):
    # x_ref: (TS, D) bf16; w_ref: (H, D, d_k) bf16 resident; b_ref: (H, 1, d_k) f32
    # out_ref: (TS, d_k) slab of the (B, H, S, d_k) output.
    h = pl.program_id(2)
    out_ref[...] = (jnp.dot(x_ref[...], w_ref[h],
                            preferred_element_type=jnp.float32)
                    + b_ref[h]).astype(out_ref.dtype)


def _project_heads(x, w, b, *, seq_tile, vmem_limit, mxu_dtype):
    """Per-head projection: x (B,S,D) @ w[h] (D,d_k) + b[h] -> (B,H,S,d_k)."""
    B, S, D = x.shape
    H, _, d_k = w.shape
    seq_tile = max(8, (seq_tile // 8) * 8)
    TS = S if S <= seq_tile else seq_tile
    ns = pl.cdiv(S, TS)
    return pl.pallas_call(
        _proj_kernel,
        out_shape=jax.ShapeDtypeStruct((B, H, S, d_k), mxu_dtype),
        grid_spec=pltpu.PrefetchScalarGridSpec(
            num_scalar_prefetch=0,
            grid=(B, ns, H),
            in_specs=[
                # x block is constant in h -> stays resident across the head loop.
                pl.BlockSpec((None, TS, D), lambda bb, s, h: (bb, s, 0)),
                # weights/bias: constant index_map -> fetched once, resident.
                pl.BlockSpec((H, D, d_k), lambda bb, s, h: (0, 0, 0)),
                pl.BlockSpec((H, 1, d_k), lambda bb, s, h: (0, 0, 0)),
            ],
            out_specs=pl.BlockSpec((None, None, TS, d_k),
                                   lambda bb, s, h: (bb, h, s, 0)),
        ),
        compiler_params=pltpu.CompilerParams(
            dimension_semantics=("parallel", "parallel", "arbitrary"),
            vmem_limit_bytes=vmem_limit,
        ),
    )(x, w, b)


# -----------------------------------------------------------------------------
# Kernel 2: grouped-head attention + output projection
# -----------------------------------------------------------------------------
def _make_attn_kernel(group: int, num_groups: int):
    def attn_kernel(qp_ref, kp_ref, vp_ref, bias_ref, wo_ref, bo_ref,
                    out_ref, acc_ref):
        hg = pl.program_id(2)

        @pl.when(hg == 0)
        def _init():
            acc_ref[...] = jnp.zeros_like(acc_ref)

        r0 = hg * group
        qh = qp_ref[...]                            # (G, TQ, d_k) bf16 (scale folded)
        kh = kp_ref[pl.ds(r0, group), :, :]         # (G, Sk, d_k) bf16, resident per b
        vh = vp_ref[pl.ds(r0, group), :, :]         # (G, Sk, d_k) bf16, resident per b

        # scores (G, TQ, Sk); additive key-padding mask (host precomputed).
        s = jnp.einsum("gqd,gkd->gqk", qh, kh,
                       preferred_element_type=jnp.float32)
        s = s + bias_ref[...]                       # (1, Sk) broadcast

        # numerically-stable softmax along keys, normalization deferred.
        m = jnp.max(s, axis=-1, keepdims=True)
        e = jnp.exp(s - m)                          # (G, TQ, Sk) f32
        l = jnp.sum(e, axis=-1, keepdims=True)      # (G, TQ, 1)

        ctx = jnp.einsum("gqk,gkd->gqd", e.astype(qh.dtype), vh,
                         preferred_element_type=jnp.float32)   # (G, TQ, d_k)
        ctx = ctx * pl.reciprocal(l, approx=True)   # deferred 1/sum(e)

        # Per-group output projection; one accumulator RMW per group (not per head).
        wo_g = wo_ref[pl.ds(r0, group), :, :]       # (G, d_k, D) bf16, resident
        og = lax.dot_general(
            ctx.astype(qh.dtype), wo_g,
            dimension_numbers=(((2,), (1,)), ((0,), (0,))),
            preferred_element_type=jnp.float32)     # (G, TQ, D)
        acc_ref[...] += jnp.sum(og, axis=0)

        @pl.when(hg == num_groups - 1)
        def _finalize():
            out_ref[...] = (acc_ref[...] + bo_ref[...]).astype(out_ref.dtype)

    return attn_kernel


# -----------------------------------------------------------------------------
# Public wrapper
# -----------------------------------------------------------------------------
def movie_mcan_mha_forward(q, k, v, mask, params, num_heads: int, *,
                           q_tile=None, head_group=None, kv_seq_tile: int = 512,
                           neg_fill: float = -1.0e9, mxu_dtype=jnp.bfloat16):
    """q: (B, Sq, D); k, v: (B, Sk, D); mask: (B, Sk) bool (True = masked key).
    params: PyTorch-convention Linear weights w{i} (D, D) and b{i} (D,)."""
    B, Sq, D = q.shape
    _, Sk, _ = k.shape
    assert D % num_heads == 0, "dim must be divisible by num_attn"
    d_k = D // num_heads
    scale = 1.0 / math.sqrt(d_k)
    out_dtype = q.dtype

    # ----- generation-aware budgets (v5e/v6e: 128 MiB VMEM, v7x: 64 MiB) ------
    vmem_cap = _vmem_capacity_bytes()
    vmem_limit = int(0.75 * vmem_cap)
    if q_tile is None:
        q_tile = 512 if vmem_cap >= 96 * 2**20 else 256
    q_tile = max(8, (q_tile // 8) * 8)

    # ----- head grouping: target >= 256 lanes of grouped head width -----------
    if head_group is None:
        head_group = num_heads
        for g in range(1, num_heads + 1):
            if num_heads % g == 0 and g * d_k >= 256:
                head_group = g
                break
    assert num_heads % head_group == 0
    G = head_group
    HG = num_heads // G

    # ----- host-side parameter prep (PyTorch Linear: y = x @ W.T + b) ---------
    def split_in_proj(w, b, s=1.0):
        wt = (w * s).reshape(num_heads, d_k, D).transpose(0, 2, 1)   # (H, D, d_k)
        bt = (b * s).reshape(num_heads, 1, d_k)
        return wt.astype(mxu_dtype), bt.astype(jnp.float32)

    wq, bq = split_in_proj(params["w0"], params["b0"], scale)        # scale folded
    wk, bk = split_in_proj(params["w1"], params["b1"])
    wv, bv = split_in_proj(params["w2"], params["b2"])
    wo = params["w3"].T.reshape(num_heads, d_k, D).astype(mxu_dtype)  # (H, d_k, D)
    bo = params["b3"].reshape(1, D).astype(jnp.float32)

    # key-padding mask -> additive f32 bias (computed once on the host)
    bias = jnp.where(mask, jnp.float32(neg_fill), jnp.float32(0.0)).reshape(B, 1, Sk)

    # ----- kernel 1: Q/K/V projected once per token (not per q tile / head) ---
    qp = _project_heads(q.astype(mxu_dtype), wq, bq, seq_tile=kv_seq_tile,
                        vmem_limit=vmem_limit, mxu_dtype=mxu_dtype)   # (B,H,Sq,d_k)
    kp = _project_heads(k.astype(mxu_dtype), wk, bk, seq_tile=kv_seq_tile,
                        vmem_limit=vmem_limit, mxu_dtype=mxu_dtype)   # (B,H,Sk,d_k)
    vp = _project_heads(v.astype(mxu_dtype), wv, bv, seq_tile=kv_seq_tile,
                        vmem_limit=vmem_limit, mxu_dtype=mxu_dtype)   # (B,H,Sk,d_k)

    # ----- kernel 2: grouped-head attention + output projection ---------------
    TQ = Sq if Sq <= q_tile else q_tile
    nt = pl.cdiv(Sq, TQ)
    grid = (B, nt, HG)

    out = pl.pallas_call(
        _make_attn_kernel(G, HG),
        out_shape=jax.ShapeDtypeStruct((B, Sq, D), out_dtype),
        grid_spec=pltpu.PrefetchScalarGridSpec(
            num_scalar_prefetch=0,
            grid=grid,
            in_specs=[
                # this group's queries: streamed, each element read exactly once
                pl.BlockSpec((None, G, TQ, d_k), lambda b, t, hg: (b, hg, t, 0)),
                # projected K/V: constant in (t, hg) -> resident per batch
                pl.BlockSpec((None, num_heads, Sk, d_k), lambda b, t, hg: (b, 0, 0, 0)),
                pl.BlockSpec((None, num_heads, Sk, d_k), lambda b, t, hg: (b, 0, 0, 0)),
                pl.BlockSpec((None, 1, Sk), lambda b, t, hg: (b, 0, 0)),
                # output-projection weight/bias: constant index -> fetched once
                pl.BlockSpec((num_heads, d_k, D), lambda b, t, hg: (0, 0, 0)),
                pl.BlockSpec((1, D), lambda b, t, hg: (0, 0)),
            ],
            out_specs=pl.BlockSpec((None, TQ, D), lambda b, t, hg: (b, t, 0)),
            scratch_shapes=[pltpu.VMEM((TQ, D), jnp.float32)],
        ),
        compiler_params=pltpu.CompilerParams(
            dimension_semantics=("parallel", "parallel", "arbitrary"),
            vmem_limit_bytes=vmem_limit,
        ),
    )(qp, kp, vp, bias, wo, bo)
    return out


# -----------------------------------------------------------------------------
# Pure-JAX reference (mirrors the PyTorch module, eval mode)
# -----------------------------------------------------------------------------
def reference_mha(q, k, v, mask, params, num_heads: int):
    B, Sq, D = q.shape
    d_k = D // num_heads

    def lin(x, i):
        return x @ params[f"w{i}"].T + params[f"b{i}"]

    qp = lin(q, 0).reshape(B, Sq, num_heads, d_k).transpose(0, 2, 1, 3)
    kp = lin(k, 1).reshape(B, -1, num_heads, d_k).transpose(0, 2, 1, 3)
    vp = lin(v, 2).reshape(B, -1, num_heads, d_k).transpose(0, 2, 1, 3)

    scores = jnp.einsum("bhqd,bhkd->bhqk", qp, kp) / math.sqrt(d_k)
    scores = jnp.where(mask[:, None, None, :], -1.0e9, scores)
    p = jax.nn.softmax(scores, axis=-1)
    ctx = jnp.einsum("bhqk,bhkd->bhqd", p, vp)
    ctx = ctx.transpose(0, 2, 1, 3).reshape(B, Sq, D)
    return lin(ctx, 3)


if __name__ == "__main__":
    B, S, DIM, H = 2, 8, 32, 4

    key = jax.random.PRNGKey(0)
    keys = jax.random.split(key, 12)

    q = jax.random.normal(keys[0], (B, S, DIM), dtype=jnp.float32)
    k = jax.random.normal(keys[1], (B, S, DIM), dtype=jnp.float32)
    v = jax.random.normal(keys[2], (B, S, DIM), dtype=jnp.float32)

    # key-padding mask: True = masked position; keep at least the first key valid
    mask = jax.random.bernoulli(keys[3], p=0.3, shape=(B, S))
    mask = mask.at[:, 0].set(False)

    # deterministic Linear params (PyTorch convention: W (out, in), b (out,))
    params = {}
    for i in range(4):
        sc = 1.0 / math.sqrt(DIM)
        params[f"w{i}"] = sc * jax.random.normal(keys[4 + 2 * i], (DIM, DIM), dtype=jnp.float32)
        params[f"b{i}"] = sc * jax.random.normal(keys[5 + 2 * i], (DIM,), dtype=jnp.float32)

    out = movie_mcan_mha_forward(q, k, v, mask, params, num_heads=H)
    out = jax.block_until_ready(out)

    ref = reference_mha(q, k, v, mask, params, num_heads=H)
    # bf16 MXU operands + EUP approximate reciprocal -> looser tolerance than
    # a pure-f32 kernel (values here are O(1)).
    np.testing.assert_allclose(np.asarray(out), np.asarray(ref), rtol=5e-2, atol=5e-2)

    print("KERNEL_OK")
</pallas_src>

<mosaic_0001>
module attributes {stable_mosaic.version = 11 : i64} {
  func.func @_proj_kernel(%arg0: i32, %arg1: i32, %arg2: i32, %arg3: memref<1x8x32xbf16, #tpu.memory_space<vmem>>, %arg4: memref<4x32x8xbf16, #tpu.memory_space<vmem>>, %arg5: memref<4x1x8xf32, #tpu.memory_space<vmem>>, %arg6: memref<1x1x8x8xbf16, #tpu.memory_space<vmem>>) attributes {dimension_semantics = [#tpu.dimension_semantics<parallel>, #tpu.dimension_semantics<parallel>, #tpu.dimension_semantics<arbitrary>], iteration_bounds = array<i64: 2, 1, 4>, scalar_prefetch = 0 : i64, scratch_operands = 0 : i64, tpu.core_type = #tpu.core_type<tc>, window_params = [{transform_indices = @transform_0, window_bounds = array<i64: 1, 8, 32>}, {pipeline_mode = #tpu.pipeline_mode<synchronous>, transform_indices = @transform_1, window_bounds = array<i64: 4, 32, 8>}, {pipeline_mode = #tpu.pipeline_mode<synchronous>, transform_indices = @transform_2, window_bounds = array<i64: 4, 1, 8>}, {transform_indices = @transform_3, window_bounds = array<i64: 1, 1, 8, 8>}]} {
    %c0 = arith.constant 0 : index
    %c0_0 = arith.constant 0 : index
    %c0_1 = arith.constant 0 : index
    %0 = vector.load %arg3[%c0, %c0_0, %c0_1] : memref<1x8x32xbf16, #tpu.memory_space<vmem>>, vector<1x8x32xbf16>
    %1 = vector.shape_cast %0 : vector<1x8x32xbf16> to vector<8x32xbf16>
    %2 = arith.index_cast %arg2 : i32 to index
    %c0_2 = arith.constant 0 : index
    %c0_3 = arith.constant 0 : index
    %3 = vector.load %arg4[%2, %c0_2, %c0_3] : memref<4x32x8xbf16, #tpu.memory_space<vmem>>, vector<1x32x8xbf16>
    %4 = vector.shape_cast %3 : vector<1x32x8xbf16> to vector<32x8xbf16>
    %cst = arith.constant dense<0.000000e+00> : vector<8x8xf32>
    %5 = tpu.matmul %1, %4, %cst {dimension_numbers = #tpu.dot_dimension_numbers<[1], [0], [0], [1], [0, 0, 1, 1], [], []>} : vector<8x32xbf16>, vector<32x8xbf16>, vector<8x8xf32> -> vector<8x8xf32>
    %6 = arith.index_cast %arg2 : i32 to index
    %c0_4 = arith.constant 0 : index
    %c0_5 = arith.constant 0 : index
    %7 = vector.load %arg5[%6, %c0_4, %c0_5] : memref<4x1x8xf32, #tpu.memory_space<vmem>>, vector<1x1x8xf32>
    %8 = vector.shape_cast %7 : vector<1x1x8xf32> to vector<1x8xf32>
    %9 = vector.broadcast %8 : vector<1x8xf32> to vector<8x8xf32>
    %10 = arith.addf %5, %9 : vector<8x8xf32>
    %11 = arith.truncf %10 : vector<8x8xf32> to vector<8x8xbf16>
    %c0_6 = arith.constant 0 : index
    %c0_7 = arith.constant 0 : index
    %c0_8 = arith.constant 0 : index
    %c0_9 = arith.constant 0 : index
    %12 = vector.load %arg6[%c0_6, %c0_7, %c0_8, %c0_9] : memref<1x1x8x8xbf16, #tpu.memory_space<vmem>>, vector<1x1x8x8xbf16>
    %13 = vector.shape_cast %12 : vector<1x1x8x8xbf16> to vector<8x8xbf16>
    %14 = vector.shape_cast %11 : vector<8x8xbf16> to vector<1x1x8x8xbf16>
    tpu.vector_store %arg6[%c0_6, %c0_7, %c0_8, %c0_9], %14 {strides = array<i32>} : memref<1x1x8x8xbf16, #tpu.memory_space<vmem>>, vector<1x1x8x8xbf16>,
    return
  }
  func.func @transform_0(%arg0: i32, %arg1: i32, %arg2: i32) -> (i32, i32, i32) {
    %c0_i32 = arith.constant 0 : i32
    %c0_i32_0 = arith.constant 0 : i32
    return %arg0, %arg1, %c0_i32 : i32, i32, i32
  }
  func.func @transform_1(%arg0: i32, %arg1: i32, %arg2: i32) -> (i32, i32, i32) {
    %c0_i32 = arith.constant 0 : i32
    %c0_i32_0 = arith.constant 0 : i32
    %c0_i32_1 = arith.constant 0 : i32
    %c0_i32_2 = arith.constant 0 : i32
    return %c0_i32, %c0_i32_0, %c0_i32_1 : i32, i32, i32
  }
  func.func @transform_2(%arg0: i32, %arg1: i32, %arg2: i32) -> (i32, i32, i32) {
    %c0_i32 = arith.constant 0 : i32
    %c0_i32_0 = arith.constant 0 : i32
    %c0_i32_1 = arith.constant 0 : i32
    %c0_i32_2 = arith.constant 0 : i32
    return %c0_i32, %c0_i32_0, %c0_i32_1 : i32, i32, i32
  }
  func.func @transform_3(%arg0: i32, %arg1: i32, %arg2: i32) -> (i32, i32, i32, i32) {
    %c0_i32 = arith.constant 0 : i32
    %c0_i32_0 = arith.constant 0 : i32
    return %arg0, %arg2, %arg1, %c0_i32 : i32, i32, i32, i32
  }
}

</mosaic_0001>

<bundles_post_ra>
// kernel: tpu_custom_call.1
= control target key start
LH: loop header
LB: loop body
LE: loop exit
PB: predicated region body
PF: predicated region fallthrough
CT: control target
= control target key end

     0   :  { %8 = vsyncpa [#allocation3], 0  ;;  %s739_s0 = inlined_call_operand.vmem [shape: bf16[2,8,32], index: 0, kind: input, shape index: {}]   ;;  %s740_s1 = inlined_call_operand.vmem [shape: bf16[4,32,8], index: 1, kind: input, shape index: {}]   ;;  %s741_s2 = inlined_call_operand.vmem [shape: f32[4,1,8], index: 2, kind: input, shape index: {}]   ;;  %s742_s3 = inlined_call_operand.hbm [shape: bf16[2,4,8,8], index: 3, kind: output, shape index: {}]  }
   0x1   :  { %10 = vsyncpa [#allocation3 + $0x1], 0  ;;  %s597_s12 = smov 0   ;;  %s599_s13 = smov 0  }
   0x2   :  { %s601_s14 = smov 0   ;;  %s603_s15 = smov 0  }
   0x3   :  { %s605_s16 = smov 0   ;;  %s607_s17 = smov 0  }
   0x4   :  { %s609_s18 = smov 0   ;;  %s611_s19 = smov 0  }
   0x5 LB: > { %s375_s20 = sadd.s32 4294967295, %s572_s19   ;;  %s376_s21 = sadd.s32 4294967294, %s572_s19   ;;  %s572_s19 = sphi %s611_s19, %s16_s19   ;;  %s568_s18 = sphi %s609_s18, %s751_s18   ;;  %s564_s17 = sphi %s607_s17, %s750_s17   ;;  %s560_s16 = sphi %s605_s16, %s749_s16   ;;  %s556_s15 = sphi %s603_s15, %s748_s15   ;;  %s552_s14 = sphi %s601_s14, %s747_s14   ;;  %s548_s13 = sphi %s599_s13, %s746_s13   ;;  %s544_s12 = sphi %s597_s12, %s745_s12  }
   0x6   : > { %s28_s22 = sadd.s32 1, %s564_s17  ;;  %s35_s23 = sadd.s32 1, %s568_s18 }
   0x7   : > { %p29_p0 = scmp.ge.s32.totalorder %s28_s22, 4  ;;  %p126_p1 = scmp.ne.s32.totalorder %s552_s14, %s548_s13 }
   0x8   : > { %p127_p2 = scmp.eq.s32.totalorder %s375_s20, 7  ;;  %p132_p5 = scmp.ne.s32.totalorder %s548_s13, %s544_s12 }
   0x9   : > { %s753_s22 = smov (%p29_p0, %s28_s22), 0  ;;  %s755_s23 = smov (!%p29_p0, %s35_s23), %s568_s18 }
   0xa   : > { %s110_s24 = ssub.s32 %s564_s17, %s753_s22  ;;  %p648_p3 = por %p127_p2, %p126_p1 }
   0xb   : > { %p37_p4 = scmp.ge.s32.totalorder %s755_s23, 2  ;;  %p133_p6 = scmp.eq.s32.totalorder %s376_s21, 7 }
   0xc   : > { %p379_p7 = scmp.ge.s32.totalorder %s572_s19, 1  ;;  %p167_p9 = scmp.lt.s32.totalorder %s572_s19, 9 }
   0xd   : > { %s757_s23 = smov (%p37_p4, %s755_s23), 0  ;;  %p657_p8 = por %p133_p6, %p132_p5 }
   0xe   : > { %s109_s27 = ssub.s32 %s568_s18, %s757_s23  ;;  %s116_s28 = sadd.s32 1, %s552_s14 }
   0xf   : > { %s111_s29 = sor.u32 %s110_s24, %s109_s27  ;;  %p168_p10 = pnand %p379_p7, %p167_p9 }
  0x10   : > { %p114_p11 = scmp.eq.s32.totalorder %s111_s29, 0  ;;  %s393_s4 = sshll.u32 (!%p168_p10), %s556_s15, 4 }
  0x11   : > { %171 = sbr.rel (%p168_p10) target bundleno = 242 (0xf2), region = 32  ;;  %p193_p12 = scmp.lt.s32.totalorder (!%p168_p10), %s560_s16, 1 }
  0x12   : > { %s666_s30 = scalar_select %p114_p11, %s552_s14, %s116_s28  }
  0x13   : > { %s204_s7 = scalar_lea.vmem (!%p168_p10), %s740_s1, %s393_s4  ;;  %s190_s21 = sand.u32 (!%p168_p10), 1, %s548_s13  }
  0x14   : > { %s380_s24 = sshll.u32 (!%p168_p10), %s190_s21, 2  ;;  %s389_s27 = sshll.u32 (!%p168_p10), %s560_s16, 2 }
  0x15   : > { %s209_s4 = scalar_lea.vmem (!%p168_p10), %s741_s2, %s556_s15  ;;  %s289_s5 = sadd.s32 (!%p168_p10), %s556_s15, %s389_s27 }
  0x16   : > { %v574_v0 = vmov 0.0   ;;  %vm575_vm0 = vmmov 0   ;;  %v478_v1 = vld [vmem:[%s204_s7 + $0x8] sm:$0xff]   ;;  %s194_s8 = scalar_select %p193_p12, %s560_s16, 1  ;;  %v479_v2 = vld [vmem:[%s204_s7] sm:$0xff]   ;;  %vm229_vm1 = vcmask 261120  }
  0x17   : > { %397 = vmatprep.subr.bf16.mxu0 %v574_v0  ;;  %401 = vmatprep.mubr.msk.bf16.mxu0 %vm575_vm0, %v574_v0  ;;  %v384_v4 = vld [vmem:[%s209_s4] ss:$0 sm:$0xff]  ;;  %s390_s6 = sshll.u32 %s289_s5, 6  ;;  %s192_s7 = scalar_lea.vmem [#allocation2], %s380_s24  ;;  %vm274_vm2 = vcmask 60416  }
  0x18   : > { %398 = vmatpush3.bf16.msra.mxu0 %v478_v1  ;;  %s381_s9 = sshll.u32 %s194_s8, 2  ;;  %s293_s8 = sshll.u32 %s192_s7, 4  ;;  %s689_s8 = int_to_ptr.vmem [resolvable:$true] %s293_s8 }
  0x19   : > { %399 = vmatprep.subr.bf16.mxu0 %v574_v0  ;;  %s199_s20 = scalar_lea.vmem %s739_s0, %s381_s9  ;;  %s687_s11 = scalar_lea.hbm %s742_s3, %s390_s6 }
  0x1a   : > { %v201_v3 = vld [vmem:[%s199_s20] sm:$0xf]  ;;  %s277_s15 = scalar_lea.sflag [#allocation3], %s190_s21  ;;  %s480_s16 = scalar_lea.vmem %s689_s8, 64 }
  0x1b   : > { %p481_p13 = scmp.ne.s32.totalorder %s689_s8, %s480_s16  ;;  %s576_s20 = smov [#allocation2]  }
  0x1c   : > { %400 = vmatpush3.bf16.msra.mxu0 %v479_v2  ;;  %s484_s24 = sshll.u32 %s576_s20, 4  ;;  %s485_s24 = int_to_ptr.vmem [resolvable:$false] %s484_s24 }
  0x1d   : > { %p482_p0 = pnand %p481_p13, %p648_p3  ;;  %s486_s27 = scalar_lea.vmem %s485_s24, 128 }
  0x1e   : > { %p487_p2 = scmp.lt.s32.totalorder %s689_s8, %s485_s24  ;;  %p488_p4 = scmp.lt.s32.totalorder %s486_s27, %s480_s16 }
  0x1f   : > { %402 = vmatmul.mubr.msk.bf16.vlgmr.msra.gmra.mxu0 %vm229_vm1, %v201_v3  ;;  %p483_p1 = pneg %p482_p0 }
  0x20   : > { %p489_p5 = por %p488_p4, %p487_p2 }
  0x22   : > { %p490_p6 = pnand %p489_p5, %p483_p1 }
  0xdf   : > { %v267_v5 = vpop.f32.mrf.mxu0 }
  0xe0   : > { %v268_v6 = vadd.f32 %v384_v4, %v267_v5 }
  0xe1   : > { %v403_v7 = vpop.f32.mrf.mxu0 }
  0xe2   : > { %v273_v8 = vpack.c.bf16 %v268_v6, %v268_v6 }
  0xe3   : > { %v270_v9 = vpop.f32.mrf.mxu0 }
  0xe4   : > { %275 = vst.msk [vmem:[%s192_s7] sm:$0xf] %vm274_vm2, %v273_v8 }
  0xe5   : > { %v404_v10 = vpop.f32.mrf.mxu0 }
  0xe6   : > { %493 = shalt.err (!%p490_p6)
}
  0xe7   : > { %s494_s28 = scalar_lea.hbm %s687_s11, 64  ;;  %s498_s4 = scalar_lea.hbm %s742_s3, 512 }
  0xe8   : > { %p495_p7 = scmp.ne.s32.totalorder %s687_s11, %s494_s28  ;;  %p499_p11 = scmp.lt.s32.totalorder %s687_s11, %s742_s3 }
  0xe9   : > { %p500_p12 = scmp.lt.s32.totalorder %s498_s4, %s494_s28 }
  0xea   : > { %p496_p9 = pnand %p495_p7, %p648_p3 }
  0xeb   : > { %p501_p13 = por %p500_p12, %p499_p11 }
  0xec   : > { %p497_p10 = pneg %p496_p9 }
  0xee   : > { %p502_p0 = pnand %p501_p13, %p497_p10 }
  0xf0   : > { %505 = shalt.err (!%p502_p0)
}
  0xf1   : > { %405 = dma.vmem_to_hbm [thread:$0]  (%p648_p3), %s689_s8, 64, %s687_s11, %s277_s15  }
  0xf2 PF: > { %p411_p1 = scmp.ge.s32.totalorder %s572_s19, 2  ;;  %s305_s7 = sand.u32 1, %s544_s12  }
  0xf3   : > { %s306_s9 = scalar_lea.sflag [#allocation3], %s305_s7 }
  0xf4   : > { %p408_p2 = pnand %p411_p1, %p657_p8 }
  0xf6   : > { %p409_p4 = pneg %p408_p2 }
  0xf8   : > { %539 = dma.done.wait (%p409_p4), %s306_s9, 64  }
  0xf9   : > { %541 = vsyncadd (%p409_p4), %s306_s9, 4294967232  ;;  %s16_s19 = sadd.s32 1, %s572_s19   ;;  %s745_s12 = smov %s548_s13 }
  0xfa   : > { %p13_p5 = scmp.ge.s32.totalorder %s16_s19, 10   ;;  %s746_s13 = smov %s552_s14 }
  0xfb   : > { %s747_s14 = smov %s666_s30  ;;  %s748_s15 = smov %s564_s17 }
  0xfc   : > { %s749_s16 = smov %s568_s18  ;;  %s750_s17 = smov %s753_s22 }
  0xfd   : > { %s751_s18 = smov %s757_s23  ;;  %15 = sbr.rel (!%p13_p5) target bundleno = 5 (0x5), region = 69 }
 0x102   :  { %311 = vsyncpa [#allocation3], 1 }
 0x103   :  { %313 = vsyncpa [#allocation3 + $0x1], 1 }

</bundles_post_ra>
